<compile_context>
chip_gen: v7x
topology: tpu7x:2x2x1
jax: 0.10.0
libtpu: 0.0.40
codegen_flags: <defaults>
</compile_context>

<pallas_src>
import jax
import jax.numpy as jnp
from jax.experimental import pallas as pl
from jax.experimental.pallas import tpu as pltpu


def _round_up(x, m):
    return ((x + m - 1) // m) * m


def _vmem_capacity_bytes(default=64 * 1024 * 1024):
    """Physical VMEM per TensorCore (v5e/v6e: 128 MiB, v7x: 64 MiB)."""
    try:
        cap = getattr(pltpu.get_tpu_info(), "vmem_capacity_bytes", None)
        if cap:
            return int(cap)
    except Exception:
        pass
    return default


def soft_attention_kernel(x_ref, w_ref, b_ref, v_ref, o_ref):
    B_blk, T, E = x_ref.shape
    A = w_ref.shape[1]

    x = x_ref[...]                                         # (B_blk, T, E)

    # Linear + tanh: one MXU matmul over the whole batch block, f32 accumulate.
    # (B_blk, T, E) -> (B_blk*T, E) is a layout-preserving view when T % 8 == 0.
    h = jnp.tanh(
        jnp.dot(
            x.reshape(B_blk * T, E),
            w_ref[...],
            preferred_element_type=jnp.float32,
        )
        + b_ref[...]
    )                                                      # (B_blk*T, A) f32

    # e = <h, v> per (batch, time) row; numerically stable softmax over T.
    e = jnp.sum(h.reshape(B_blk, T, A) * v_ref[...], axis=-1)   # (B_blk, T)
    e = e - jnp.max(e, axis=-1, keepdims=True)
    p = jnp.exp(e)
    a = p / jnp.sum(p, axis=-1, keepdims=True)             # exact recip (accuracy)

    # Weighted sum over T on the VPU/XLU (mul + sublane reduce).  Avoids B_blk
    # near-empty (1,T)@(T,E) MXU matmuls; data is already resident in VMEM and
    # the VPU has slack in this bandwidth-bound regime.
    out = jnp.sum(x.astype(jnp.float32) * a[:, :, None], axis=1)   # (B_blk, E)

    # Sublane-dense writeback: the whole (b_blk, E) block, no flattening reshape.
    o_ref[...] = out.astype(o_ref.dtype)


def soft_attention(values, W, b, v, *, b_blk=None):
    """values: (B, T, E); W: (E, A); b: (A,); v: (A,).

    Returns the same as the PyTorch module: (B, E) for B > 1, (E,) for B == 1.
    """
    B, T, E = values.shape
    A = W.shape[1]

    vmem_cap = _vmem_capacity_bytes()
    # Leave headroom under physical VMEM: ~48 MiB on v7x (64 MiB), ~96 MiB on
    # v5e/v6e (128 MiB).
    vmem_limit = int(min((vmem_cap * 3) // 4, 100 * 1024 * 1024))

    if b_blk is None:
        # HBM-bandwidth-bound (AI ~ A flop/byte): target a ~2 MiB (64 MiB-VMEM
        # parts) to ~4 MiB (128 MiB-VMEM parts) x-block, counting the (8,128)
        # VMEM padding of each block row.
        target = (2 if vmem_cap <= 64 * 1024 * 1024 else 4) * 1024 * 1024
        row_bytes = _round_up(T, 8) * _round_up(E, 128) * 4
        b_blk = max(1, target // row_bytes)
        if b_blk >= B:
            b_blk = B
            # v7x megacore: give >= 2 "parallel" grid steps when the batch can
            # be split on a sublane-aligned (multiple-of-8) boundary.
            if B >= 16:
                b_blk = _round_up(B // 2, 8)
        elif b_blk >= 8:
            b_blk = (b_blk // 8) * 8       # sublane-aligned writeback blocks
        else:
            b_blk = min(8, B)              # satisfy the (8,128) rule on out block

    num_blocks = -(-B // b_blk)   # ragged last block masked by Pallas; no HBM pad

    # Small params: reshape only (no HBM pass over x); f32 for elementwise math.
    b2 = b.reshape(1, A).astype(jnp.float32)
    v2 = v.reshape(1, A).astype(jnp.float32)

    out = pl.pallas_call(
        soft_attention_kernel,
        out_shape=jax.ShapeDtypeStruct((B, E), values.dtype),
        grid_spec=pl.GridSpec(
            grid=(num_blocks,),
            in_specs=[
                pl.BlockSpec((b_blk, T, E), lambda i: (i, 0, 0)),
                pl.BlockSpec((E, A), lambda i: (0, 0)),
                pl.BlockSpec((1, A), lambda i: (0, 0)),
                pl.BlockSpec((1, A), lambda i: (0, 0)),
            ],
            out_specs=pl.BlockSpec((b_blk, E), lambda i: (i, 0)),
        ),
        compiler_params=pltpu.CompilerParams(
            dimension_semantics=("parallel",),
            vmem_limit_bytes=vmem_limit,
        ),
    )(values, W, b2, v2)

    # Match the PyTorch module's trailing `.squeeze()` for B == 1.
    return jnp.squeeze(out) if B == 1 else out


def soft_attention_ref(values, W, b, v):
    """Pure-JAX f32 reference mirroring the PyTorch forward."""
    h = jnp.tanh(values @ W + b)                     # (B, T, A)
    e = h @ v                                        # (B, T)
    a = jax.nn.softmax(e, axis=-1)                   # (B, T)
    return jnp.sum(values * a[:, :, None], axis=1)   # (B, E)


if __name__ == "__main__":
    B, T, E, A = 2, 8, 32, 16  # batch, seq, emb_dim, attn_dim

    key = jax.random.PRNGKey(0)
    kx, kw, kb, kv = jax.random.split(key, 4)

    values = jax.random.normal(kx, (B, T, E), dtype=jnp.float32)

    # Deterministic parameter init (matches nn.Linear / module init ranges).
    stdv_w = 1.0 / jnp.sqrt(jnp.float32(E))
    stdv_v = 1.0 / jnp.sqrt(jnp.float32(A))
    W = jax.random.uniform(kw, (E, A), jnp.float32, -stdv_w, stdv_w)
    b = jax.random.uniform(kb, (A,), jnp.float32, -stdv_w, stdv_w)
    v = jax.random.uniform(kv, (A,), jnp.float32, -stdv_v, stdv_v)

    out = jax.block_until_ready(soft_attention(values, W, b, v))
    ref = soft_attention_ref(values, W, b, v)

    assert out.shape == (B, E), out.shape
    # f32 end-to-end (exact reciprocal) -> tight tolerance.
    assert jnp.allclose(out, ref, atol=1e-3, rtol=1e-3), (
        float(jnp.max(jnp.abs(out - ref)))
    )
    print("KERNEL_OK")
</pallas_src>

<mosaic_0001>
module attributes {stable_mosaic.version = 11 : i64} {
  func.func @soft_attention_kernel(%arg0: i32, %arg1: memref<2x8x32xf32, #tpu.memory_space<vmem>>, %arg2: memref<32x16xf32, #tpu.memory_space<vmem>>, %arg3: memref<1x16xf32, #tpu.memory_space<vmem>>, %arg4: memref<1x16xf32, #tpu.memory_space<vmem>>, %arg5: memref<2x32xf32, #tpu.memory_space<vmem>>) attributes {dimension_semantics = [#tpu.dimension_semantics<parallel>], iteration_bounds = array<i64: 1>, scalar_prefetch = 0 : i64, scratch_operands = 0 : i64, tpu.core_type = #tpu.core_type<tc>, window_params = [{transform_indices = @transform_0, window_bounds = array<i64: 2, 8, 32>}, {pipeline_mode = #tpu.pipeline_mode<synchronous>, transform_indices = @transform_1, window_bounds = array<i64: 32, 16>}, {pipeline_mode = #tpu.pipeline_mode<synchronous>, transform_indices = @transform_2, window_bounds = array<i64: 1, 16>}, {pipeline_mode = #tpu.pipeline_mode<synchronous>, transform_indices = @transform_3, window_bounds = array<i64: 1, 16>}, {transform_indices = @transform_4, window_bounds = array<i64: 2, 32>}]} {
    %c0 = arith.constant 0 : index
    %c0_0 = arith.constant 0 : index
    %c0_1 = arith.constant 0 : index
    %0 = vector.load %arg1[%c0, %c0_0, %c0_1] : memref<2x8x32xf32, #tpu.memory_space<vmem>>, vector<2x8x32xf32>
    %1 = vector.shape_cast %0 : vector<2x8x32xf32> to vector<16x32xf32>
    %c0_2 = arith.constant 0 : index
    %c0_3 = arith.constant 0 : index
    %2 = vector.load %arg2[%c0_2, %c0_3] : memref<32x16xf32, #tpu.memory_space<vmem>>, vector<32x16xf32>
    %cst = arith.constant dense<0.000000e+00> : vector<16x16xf32>
    %3 = tpu.matmul %1, %2, %cst {dimension_numbers = #tpu.dot_dimension_numbers<[1], [0], [0], [1], [0, 0, 1, 1], [], []>} : vector<16x32xf32>, vector<32x16xf32>, vector<16x16xf32> -> vector<16x16xf32>
    %c0_4 = arith.constant 0 : index
    %c0_5 = arith.constant 0 : index
    %4 = vector.load %arg3[%c0_4, %c0_5] : memref<1x16xf32, #tpu.memory_space<vmem>>, vector<1x16xf32>
    %5 = vector.broadcast %4 : vector<1x16xf32> to vector<16x16xf32>
    %6 = arith.addf %3, %5 : vector<16x16xf32>
    %7 = math.tanh %6 : vector<16x16xf32>
    %8 = vector.shape_cast %7 : vector<16x16xf32> to vector<2x8x16xf32>
    %c0_6 = arith.constant 0 : index
    %c0_7 = arith.constant 0 : index
    %9 = vector.load %arg4[%c0_6, %c0_7] : memref<1x16xf32, #tpu.memory_space<vmem>>, vector<1x16xf32>
    %10 = vector.shape_cast %9 : vector<1x16xf32> to vector<1x1x16xf32>
    %11 = vector.broadcast %10 : vector<1x1x16xf32> to vector<2x8x16xf32>
    %12 = arith.mulf %8, %11 : vector<2x8x16xf32>
    %cst_8 = arith.constant dense<0.000000e+00> : vector<2x8xf32>
    %13 = vector.multi_reduction <add>, %12, %cst_8 [2] : vector<2x8x16xf32> to vector<2x8xf32>
    %cst_9 = arith.constant dense<0xFF800000> : vector<2xf32>
    %14 = vector.multi_reduction <maximumf>, %13, %cst_9 [1] : vector<2x8xf32> to vector<2xf32>
    %15 = vector.shape_cast %14 : vector<2xf32> to vector<2x1xf32>
    %16 = vector.broadcast %15 : vector<2x1xf32> to vector<2x8xf32>
    %17 = arith.subf %13, %16 : vector<2x8xf32>
    %18 = math.exp %17 : vector<2x8xf32>
    %cst_10 = arith.constant dense<0.000000e+00> : vector<2xf32>
    %19 = vector.multi_reduction <add>, %18, %cst_10 [1] : vector<2x8xf32> to vector<2xf32>
    %20 = vector.shape_cast %19 : vector<2xf32> to vector<2x1xf32>
    %21 = vector.broadcast %20 : vector<2x1xf32> to vector<2x8xf32>
    %22 = arith.divf %18, %21 : vector<2x8xf32>
    %23 = vector.shape_cast %22 : vector<2x8xf32> to vector<2x8x1xf32>
    %24 = vector.broadcast %23 : vector<2x8x1xf32> to vector<2x8x32xf32>
    %25 = arith.mulf %0, %24 : vector<2x8x32xf32>
    %cst_11 = arith.constant dense<0.000000e+00> : vector<2x32xf32>
    %26 = vector.multi_reduction <add>, %25, %cst_11 [1] : vector<2x8x32xf32> to vector<2x32xf32>
    %c0_12 = arith.constant 0 : index
    %c0_13 = arith.constant 0 : index
    %27 = vector.load %arg5[%c0_12, %c0_13] : memref<2x32xf32, #tpu.memory_space<vmem>>, vector<2x32xf32>
    tpu.vector_store %arg5[%c0_12, %c0_13], %26 {strides = array<i32>} : memref<2x32xf32, #tpu.memory_space<vmem>>, vector<2x32xf32>,
    return
  }
  func.func @transform_0(%arg0: i32) -> (i32, i32, i32) {
    %c0_i32 = arith.constant 0 : i32
    %c0_i32_0 = arith.constant 0 : i32
    %c0_i32_1 = arith.constant 0 : i32
    return %arg0, %c0_i32, %c0_i32_0 : i32, i32, i32
  }
  func.func @transform_1(%arg0: i32) -> (i32, i32) {
    %c0_i32 = arith.constant 0 : i32
    %c0_i32_0 = arith.constant 0 : i32
    %c0_i32_1 = arith.constant 0 : i32
    return %c0_i32, %c0_i32_0 : i32, i32
  }
  func.func @transform_2(%arg0: i32) -> (i32, i32) {
    %c0_i32 = arith.constant 0 : i32
    %c0_i32_0 = arith.constant 0 : i32
    %c0_i32_1 = arith.constant 0 : i32
    return %c0_i32, %c0_i32_0 : i32, i32
  }
  func.func @transform_3(%arg0: i32) -> (i32, i32) {
    %c0_i32 = arith.constant 0 : i32
    %c0_i32_0 = arith.constant 0 : i32
    %c0_i32_1 = arith.constant 0 : i32
    return %c0_i32, %c0_i32_0 : i32, i32
  }
  func.func @transform_4(%arg0: i32) -> (i32, i32) {
    %c0_i32 = arith.constant 0 : i32
    %c0_i32_0 = arith.constant 0 : i32
    return %arg0, %c0_i32 : i32, i32
  }
}

</mosaic_0001>

<bundles_post_ra>
// kernel: tpu_custom_call.1
= control target key start
LH: loop header
LB: loop body
LE: loop exit
PB: predicated region body
PF: predicated region fallthrough
CT: control target
= control target key end

     0   :  { %vm31_vm0 = vcmask 261120   ;;  %s398_s0 = inlined_call_operand.vmem [shape: f32[2,8,32], index: 0, kind: input, shape index: {}]   ;;  %s399_s1 = inlined_call_operand.vmem [shape: f32[32,16], index: 1, kind: input, shape index: {}]   ;;  %s400_s2 = inlined_call_operand.vmem [shape: f32[1,16], index: 2, kind: input, shape index: {}]   ;;  %s401_s3 = inlined_call_operand.vmem [shape: f32[1,16], index: 3, kind: input, shape index: {}]   ;;  %s402_s4 = inlined_call_operand.hbm [shape: f32[2,32], index: 4, kind: output, shape index: {}]  }
   0x1   :  { %v20_v0 = vld [vmem:[%s399_s1] sm:$0xff]  ;;  %v21_v1 = vld [vmem:[%s399_s1 + $0x8] sm:$0xff]  ;;  %v22_v2 = vld [vmem:[%s399_s1 + $0x10] sm:$0xff] }
   0x2   :  { %v270_v3 = vpack.c.bf16 %v21_v1, %v20_v0  ;;  %v23_v4 = vld [vmem:[%s399_s1 + $0x18] sm:$0xff]  ;;  %v360_v5 = vld [vmem:[%s398_s0] sm:$0xff] }
   0x3   :  { %v274_v6 = vpack.c.bf16 %v23_v4, %v22_v2  ;;  %267 = vmatprep.mubr.msk.f32.mxu0 %vm31_vm0, %v360_v5 }
   0x4   :  { %9 = vsyncpa [#allocation3], 0  ;;  %271 = vmatprep.subr.bf16.mxu0 %v270_v3  ;;  %v367_v7 = vld [vmem:[%s398_s0 + $0x8] sm:$0xff]  ;;  %v249_v8 = vld [vmem:[%s400_s2] ss:$0 sm:$0xff]  ;;  %vm124_vm1 = vcmask 130048   ;;  %v133_v20 = vlaneseq }
   0x5   :  { %273 = vmatpush3.bf16.msra.mxu0 %v270_v3  ;;  %v252_v13 = vld [vmem:[%s401_s3] ss:$0 sm:$0xff]  ;;  %vm143_vm2 = vcmask 1041409   ;;  %vm146_vm3 = vcmask 58368   ;;  %v318_v30 = vmov 0   ;;  %s319_s0 = smov [#allocation2]  }
   0x6   :  { %275 = vmatprep.subr.bf16.mxu0 %v274_v6  ;;  %v134_v21 = vand.u32 127, %v133_v20  ;;  %v136_v22 = vshrl.u32 %v133_v20, 7  ;;  %281 = vset.pattern.permute.xlu0 %v318_v30  ;;  %s241_s2 = sshll.u32 %s319_s0, 4  ;;  %vm233_vm4 = vcmask 254976   ;;  %s242_s2 = int_to_ptr.vmem [resolvable:$true] %s241_s2 }
   0x7   :  { %280 = vset.pattern.permute.xlu1 %v318_v30  ;;  %s294_s3 = scalar_lea.vmem %s242_s2, 32  ;;  %p299_p1 = scmp.lt.s32.totalorder %s242_s2, %s242_s2 }
   0x8   :  { %v137_v24 = vsub.s32 %v134_v21, %v136_v22  ;;  %v153_v31 = vsub.s32 0, %v136_v22  ;;  %v157_v32 = vsub.s32 1, %v136_v22  ;;  %p295_p0 = scmp.ne.s32.totalorder %s242_s2, %s294_s3  ;;  %p300_p2 = scmp.lt.s32.totalorder %s294_s3, %s294_s3 }
   0x9   :  { %277 = vmatpush3.bf16.msra.mxu0 %v274_v6 }
   0xa   :  { %p301_p3 = por %p300_p2, %p299_p1 }
   0xc   :  { %268 = vmatmul.mubr.msk.f32.vlgmr.msra.gmra.mrb[0].mxu0 %vm31_vm0, %v367_v7  ;;  %p302_p4 = pnand %p301_p3, %p295_p0 }
  0xdf   :  { %v269_v9 = vpop.f32.mrb[0].mxu0 }
  0xe0   :  { %v110_v10 = vadd.f32 %v269_v9, %v249_v8  ;;  %v104_v11 = vpop.f32.mrb[1].mxu0 }
  0xe1   :  { %v105_v12 = vadd.f32 %v249_v8, %v104_v11 }
  0xe2   :  { %282 = vtanh.f32 %v110_v10 }
  0xe3   :  { %284 = vtanh.f32 %v105_v12 }
  0xec   :  { %v283_v14 = vpop.eup %282 }
  0xed   :  { %v285_v15 = vpop.eup %284  ;;  %v123_v18 = vmul.f32 %v283_v14, %v252_v13 }
  0xee   :  { %v122_v16 = vmul.f32 %v285_v15, %v252_v13 }
  0xef   :  { %v128_v19 = vsel %vm124_vm1, %v123_v18, 0.0 }
  0xf0   :  { %v125_v17 = vsel %vm124_vm1, %v122_v16, 0.0 }
  0xf1   :  { %126 = vadd.xlane.f32.xlu0 %v125_v17 }
  0xf5   :  { %129 = vadd.xlane.f32.xlu0 %v128_v19 }
 0x17e   :  { %v127_v23 = vpop.xlane.xlu0 %126 }
 0x17f   :  { %v138_v26 = vrot.slane %v127_v23, %v137_v24 }
 0x182   :  { %v130_v25 = vpop.xlane.xlu0 %129 }
 0x183   :  { %v142_v27 = vrot.slane %v130_v25, %v137_v24 }
 0x185   :  { %v144_v28 = vsel %vm143_vm2, %v142_v27, %v138_v26 }
 0x186   :  { %v147_v29 = vsel %vm146_vm3, %v144_v28, -inf }
 0x187   :  { %148 = vmax.xlane.f32.xlu1 %v147_v29 }
 0x214   :  { %v149_v33 = vpop.xlane.xlu1 %148 }
 0x215   :  { %v154_v34 = vrot.slane %v149_v33, %v153_v31  ;;  %v158_v35 = vrot.slane %v149_v33, %v157_v32 }
 0x217   :  { %v161_v36 = vsub.f32 %v127_v23, %v154_v34  ;;  %v162_v37 = vsub.f32 %v130_v25, %v158_v35 }
 0x219   :  { %v163_v38 = vmul.f32 1.442695, %v161_v36  ;;  %v165_v39 = vmul.f32 1.442695, %v162_v37 }
 0x21b   :  { %286 = vpow2.f32 %v163_v38 }
 0x21c   :  { %288 = vpow2.f32 %v165_v39 }
 0x225   :  { %v287_v40 = vpop.eup %286 }
 0x226   :  { %v289_v41 = vpop.eup %288  ;;  %170 = vperm.xlu1 %280, %v287_v40  }
 0x227   :  { %173 = vperm.xlu0 %281, %v289_v41  }
 0x2a5   :  { %v171_v42 = vpop.permute.xlu1 %170 }
 0x2a6   :  { %v174_v43 = vpop.permute.xlu0 %173  ;;  %v178_v44 = vrot.slane %v171_v42, %v137_v24 }
 0x2a7   :  { %v182_v45 = vrot.slane %v174_v43, %v137_v24 }
 0x2a9   :  { %v183_v46 = vsel %vm143_vm2, %v182_v45, %v178_v44 }
 0x2aa   :  { %v185_v47 = vsel %vm146_vm3, %v183_v46, 0.0 }
 0x2ab   :  { %186 = vadd.xlane.f32.xlu1 %v185_v47 }
 0x338   :  { %v187_v48 = vpop.xlane.xlu1 %186 }
 0x339   :  { %v192_v49 = vrot.slane %v187_v48, %v153_v31  ;;  %v196_v50 = vrot.slane %v187_v48, %v157_v32 }
 0x33b   :  { %290 = vrcp.f32 %v192_v49 }
 0x33c   :  { %292 = vrcp.f32 %v196_v50 }
 0x345   :  { %v291_v51 = vpop.eup %290 }
 0x346   :  { %v200_v52 = vmul.f32 %v291_v51, %v287_v40  ;;  %v293_v53 = vpop.eup %292 }
 0x347   :  { %v202_v54 = vmul.f32 %v293_v53, %v289_v41 }
 0x348   :  { %205 = vperm.xlu0 %281, %v200_v52  }
 0x34c   :  { %210 = vperm.xlu0 %281, %v202_v54  }
 0x3c7   :  { %v206_v55 = vpop.permute.xlu0 %205 }
 0x3c8   :  { %v213_v56 = vmul.f32 %v206_v55, %v360_v5 }
 0x3ca   :  { %v215_v57 = vsel %vm31_vm0, %v213_v56, 0.0 }
 0x3cb   :  { %v216_v58 = vrot.slane %v215_v57, 4  ;;  %v211_v59 = vpop.permute.xlu0 %210 }
 0x3cc   :  { %v214_v60 = vmul.f32 %v211_v59, %v367_v7 }
 0x3cd   :  { %v217_v61 = vadd.f32 %v216_v58, %v215_v57 }
 0x3ce   :  { %v222_v62 = vsel %vm31_vm0, %v214_v60, 0.0 }
 0x3cf   :  { %v218_v63 = vrot.slane %v217_v61, 2  ;;  %v223_v0 = vrot.slane %v222_v62, 4 }
 0x3d1   :  { %v219_v1 = vadd.f32 %v218_v63, %v217_v61  ;;  %v224_v2 = vadd.f32 %v223_v0, %v222_v62 }
 0x3d3   :  { %v225_v3 = vrot.slane %v224_v2, 2  ;;  %v220_v4 = vrot.slane %v219_v1, 1 }
 0x3d5   :  { %v226_v6 = vadd.f32 %v225_v3, %v224_v2  ;;  %v221_v5 = vadd.f32 %v220_v4, %v219_v1 }
 0x3d7   :  { %v227_v8 = vrot.slane %v226_v6, 1 }
 0x3d9   :  { %v228_v9 = vadd.f32 %v227_v8, %v226_v6 }
 0x3db   :  { %v231_v10 = vsel %vm143_vm2, %v228_v9, %v221_v5 }
 0x3dc   :  { %234 = vst.msk [vmem:[#allocation2] sm:$0x3] %vm233_vm4, %v231_v10 }
 0x3dd   :  { %305 = shalt.err (!%p302_p4)
}
 0x3de   :  { %s306_s6 = scalar_lea.hbm %s402_s4, 32 }
 0x3df   :  { %p307_p5 = scmp.ne.s32.totalorder %s402_s4, %s306_s6  ;;  %p310_p6 = scmp.lt.u32.totalorder %s306_s6, %s402_s4 }
 0x3e1   :  { %p312_p7 = pnand %p310_p6, %p307_p5 }
 0x3e3   :  { %315 = shalt.err (!%p312_p7)
}
 0x3e4   :  { %244 = dma.vmem_to_hbm [thread:$0]  %s242_s2, 32, %s402_s4, [#allocation3]  }
 0x3e5   :  { %316 = dma.done.wait [#allocation3], 32  }
 0x3e6   :  { %317 = vsyncadd [#allocation3], 4294967264 }
 0x3e7   :  { %248 = vsyncpa [#allocation3], 1 }

</bundles_post_ra>
